<compile_context>
chip_gen: v5e
topology: v5e:2x2
jax: 0.10.0
libtpu: 0.0.40
codegen_flags: <defaults>
</compile_context>

<pallas_src>
import jax
import jax.numpy as jnp
from jax import lax
from jax.experimental import pallas as pl
from jax.experimental.pallas import tpu as pltpu


# ----------------------------------------------------------------------------
# Kernel: the whole T-step GRU encoder in one invocation.
# ----------------------------------------------------------------------------
def gru_encoder_kernel(tok_ref,   # scalar-prefetch: (T,) int32 token ids (SMEM)
                       emb_ref,   # (V, H)   full embedding table (VMEM-resident)
                       h0_ref,    # (1, H)   initial hidden state
                       wx_ref,    # (H, 4H)  x-path weight  [Wir^T | Wiz^T | Win^T | 0]
                       wh_ref,    # (H, 4H)  h-path weight  [Whr^T | Whz^T | 0 | Whn^T]
                       b_ref,     # (1, 4H)  fused bias     [bir+bhr | biz+bhz | bin | bhn]
                       out_ref):  # (T, H)   per-step GRU outputs (resident; one writeback)
    T = out_ref.shape[0]
    H = h0_ref.shape[-1]

    # Hoist all resident loads out of the timestep loop.
    wx = wx_ref[...]          # (H, 4H)
    wh = wh_ref[...]          # (H, 4H)
    b = b_ref[...]            # (1, 4H)

    def step(t, h):
        tok = tok_ref[t]                                   # SMEM scalar read
        x = emb_ref[pl.ds(tok, 1), :]                      # (1, H) in-VMEM row gather

        # Two (1,H)@(H,4H) MXU pushes; 4H = 128 lanes -> single pass on all gens.
        g = (jnp.dot(x, wx, preferred_element_type=jnp.float32)
             + jnp.dot(h, wh, preferred_element_type=jnp.float32)
             + b)                                          # (1, 4H)

        r = jax.nn.sigmoid(g[:, 0:H])                      # r/z already summed by matmul
        z = jax.nn.sigmoid(g[:, H:2 * H])
        n = jnp.tanh(g[:, 2 * H:3 * H] + r * g[:, 3 * H:4 * H])
        h_new = (1.0 - z) * n + z * h

        out_ref[pl.ds(t, 1), :] = h_new                    # row t of the resident slab
        return h_new                                       # hidden stays in vregs

    lax.fori_loop(0, T, step, h0_ref[...], unroll=True)


# ----------------------------------------------------------------------------
# One-time parameter preparation (all transposes / fusions hoisted off the hot path).
# ----------------------------------------------------------------------------
def prepare_encoder_params(emb_table, w_ih, w_hh, b_ih, b_hh):
    """w_ih, w_hh: (3H, H) torch.nn.GRU layout (gates r, z, n stacked on dim 0).

    Returns (emb_table f32, wx (H,4H), wh (H,4H), b (1,4H)) with column layout
    [r | z | i_n | h_n]; r/z columns receive both x- and h-path weights so the
    matmul output is already the summed pre-activation.
    """
    H = w_ih.shape[1]
    w_ir, w_iz, w_in = w_ih[0:H], w_ih[H:2 * H], w_ih[2 * H:3 * H]
    w_hr, w_hz, w_hn = w_hh[0:H], w_hh[H:2 * H], w_hh[2 * H:3 * H]
    zeros = jnp.zeros((H, H), jnp.float32)
    wx = jnp.concatenate([w_ir.T, w_iz.T, w_in.T, zeros], axis=1)   # (H, 4H)
    wh = jnp.concatenate([w_hr.T, w_hz.T, zeros, w_hn.T], axis=1)   # (H, 4H)
    b_ir, b_iz, b_in = b_ih[0:H], b_ih[H:2 * H], b_ih[2 * H:3 * H]
    b_hr, b_hz, b_hn = b_hh[0:H], b_hh[H:2 * H], b_hh[2 * H:3 * H]
    b = jnp.concatenate([b_ir + b_hr, b_iz + b_hz, b_in, b_hn]).reshape(1, 4 * H)
    return emb_table.astype(jnp.float32), wx.astype(jnp.float32), \
        wh.astype(jnp.float32), b.astype(jnp.float32)


# ----------------------------------------------------------------------------
# Fused-sequence forward: all T encoder steps in ONE pallas_call, one grid step.
# ----------------------------------------------------------------------------
def encoder_forward_sequence(tokens, hidden0, emb_table, wx, wh, b):
    """tokens: (T,) int; hidden0: (1,1,H) f32.
    Returns (outputs (T,1,H), final hidden (1,1,H))."""
    T = int(tokens.shape[0])
    V, H = emb_table.shape
    h2 = hidden0.reshape(1, H)

    outs = pl.pallas_call(
        gru_encoder_kernel,
        out_shape=jax.ShapeDtypeStruct((T, H), jnp.float32),
        grid_spec=pltpu.PrefetchScalarGridSpec(
            num_scalar_prefetch=1,          # token ids -> SMEM, drive in-kernel gather
            grid=(1,),                      # single invocation; loop lives in-kernel
            in_specs=[
                pl.BlockSpec((V, H), lambda i, tok: (0, 0)),         # emb table, resident
                pl.BlockSpec((1, H), lambda i, tok: (0, 0)),         # h0
                pl.BlockSpec((H, 4 * H), lambda i, tok: (0, 0)),     # wx
                pl.BlockSpec((H, 4 * H), lambda i, tok: (0, 0)),     # wh
                pl.BlockSpec((1, 4 * H), lambda i, tok: (0, 0)),     # bias
            ],
            out_specs=pl.BlockSpec((T, H), lambda i, tok: (0, 0)),   # one HBM writeback
        ),
        compiler_params=pltpu.CompilerParams(
            dimension_semantics=("arbitrary",)),
    )(tokens.astype(jnp.int32), emb_table, h2, wx, wh, b)

    outputs = outs.reshape(T, 1, H)
    hidden = outs[T - 1].reshape(1, 1, H)   # final hidden == last GRU output
    return outputs, hidden


# ----------------------------------------------------------------------------
# Single-step forward mirroring the PyTorch module's forward(input, hidden).
# (Per-call dispatch dominates at T=1 — prefer the fused-sequence path in loops.)
# ----------------------------------------------------------------------------
def encoder_forward(token, hidden, emb_table, wx, wh, b):
    """token: (1,) int; hidden: (1,1,H) f32. Returns (output, hidden) each (1,1,H)."""
    outs, hid = encoder_forward_sequence(token.reshape(1), hidden, emb_table, wx, wh, b)
    H = hidden.shape[-1]
    return outs.reshape(1, 1, H), hid


# ----------------------------------------------------------------------------
# Pure-JAX reference mirroring torch.nn.GRU (gate order r, z, n).
# ----------------------------------------------------------------------------
def encoder_reference_step(token_id, h, emb_table, w_ih, w_hh, b_ih, b_hh):
    H = h.shape[-1]
    x = emb_table[token_id].reshape(1, H)
    gi = x @ w_ih.T + b_ih
    gh = h @ w_hh.T + b_hh
    i_r, i_z, i_n = gi[:, 0:H], gi[:, H:2 * H], gi[:, 2 * H:3 * H]
    h_r, h_z, h_n = gh[:, 0:H], gh[:, H:2 * H], gh[:, 2 * H:3 * H]
    r = jax.nn.sigmoid(i_r + h_r)
    z = jax.nn.sigmoid(i_z + h_z)
    n = jnp.tanh(i_n + r * h_n)
    return (1.0 - z) * n + z * h


def encoder_reference_sequence(tokens, hidden0, emb_table, w_ih, w_hh, b_ih, b_hh):
    H = hidden0.shape[-1]
    h = hidden0.reshape(1, H)
    outs = []
    for t in range(tokens.shape[0]):
        h = encoder_reference_step(tokens[t], h, emb_table, w_ih, w_hh, b_ih, b_hh)
        outs.append(h)
    return jnp.stack(outs).reshape(-1, 1, H), h.reshape(1, 1, H)


if __name__ == "__main__":
    INPUT_SIZE = 64   # vocab size
    HIDDEN = 32       # hidden_size
    SEQ_LEN = 8       # fused-sequence length

    key = jax.random.PRNGKey(0)
    k_emb, k_wih, k_whh, k_bih, k_bhh, k_tok = jax.random.split(key, 6)

    # Deterministic parameter init (shapes per nn.Embedding / nn.GRU).
    scale = 1.0 / jnp.sqrt(HIDDEN)
    emb_table = jax.random.normal(k_emb, (INPUT_SIZE, HIDDEN), jnp.float32)
    w_ih = jax.random.uniform(k_wih, (3 * HIDDEN, HIDDEN), jnp.float32, -scale, scale)
    w_hh = jax.random.uniform(k_whh, (3 * HIDDEN, HIDDEN), jnp.float32, -scale, scale)
    b_ih = jax.random.uniform(k_bih, (3 * HIDDEN,), jnp.float32, -scale, scale)
    b_hh = jax.random.uniform(k_bhh, (3 * HIDDEN,), jnp.float32, -scale, scale)

    # One-time parameter prep (transposes / gate fusion hoisted out of the hot path).
    emb_p, wx, wh, b = prepare_encoder_params(emb_table, w_ih, w_hh, b_ih, b_hh)

    # Inputs: a token sequence and the initial hidden state (initHidden -> zeros).
    tokens = jax.random.randint(k_tok, (SEQ_LEN,), 0, INPUT_SIZE, jnp.int32)
    hidden0 = jnp.zeros((1, 1, HIDDEN), jnp.float32)

    # --- Fused-sequence path (one pallas_call, one grid step, T in-kernel steps) ---
    outs, hid = encoder_forward_sequence(tokens, hidden0, emb_p, wx, wh, b)
    outs = jax.block_until_ready(outs)
    hid = jax.block_until_ready(hid)

    ref_outs, ref_hid = encoder_reference_sequence(
        tokens, hidden0, emb_table, w_ih, w_hh, b_ih, b_hh)
    assert outs.shape == (SEQ_LEN, 1, HIDDEN) and hid.shape == (1, 1, HIDDEN)
    assert jnp.allclose(outs, ref_outs, atol=1e-5, rtol=1e-5)
    assert jnp.allclose(hid, ref_hid, atol=1e-5, rtol=1e-5)

    # --- Single-step path (exactly the original module forward(input, hidden)) ---
    out1, hid1 = encoder_forward(tokens[:1], hidden0, emb_p, wx, wh, b)
    out1 = jax.block_until_ready(out1)
    hid1 = jax.block_until_ready(hid1)
    ref_h1 = encoder_reference_step(tokens[0], hidden0.reshape(1, HIDDEN),
                                    emb_table, w_ih, w_hh, b_ih, b_hh)
    assert out1.shape == (1, 1, HIDDEN) and hid1.shape == (1, 1, HIDDEN)
    assert jnp.allclose(out1.reshape(1, HIDDEN), ref_h1, atol=1e-5, rtol=1e-5)
    assert jnp.allclose(hid1.reshape(1, HIDDEN), ref_h1, atol=1e-5, rtol=1e-5)

    print("KERNEL_OK")
</pallas_src>

<mosaic_0001>
module attributes {stable_mosaic.version = 11 : i64} {
  func.func @gru_encoder_kernel(%arg0: i32, %arg1: memref<8xi32, #tpu.memory_space<smem>>, %arg2: memref<64x32xf32, #tpu.memory_space<vmem>>, %arg3: memref<1x32xf32, #tpu.memory_space<vmem>>, %arg4: memref<32x128xf32, #tpu.memory_space<vmem>>, %arg5: memref<32x128xf32, #tpu.memory_space<vmem>>, %arg6: memref<1x128xf32, #tpu.memory_space<vmem>>, %arg7: memref<8x32xf32, #tpu.memory_space<vmem>>) attributes {dimension_semantics = [#tpu.dimension_semantics<arbitrary>], iteration_bounds = array<i64: 1>, scalar_prefetch = 1 : i64, scratch_operands = 0 : i64, tpu.core_type = #tpu.core_type<tc>, window_params = [{pipeline_mode = #tpu.pipeline_mode<synchronous>, transform_indices = @transform_0, window_bounds = array<i64: 64, 32>}, {pipeline_mode = #tpu.pipeline_mode<synchronous>, transform_indices = @transform_1, window_bounds = array<i64: 1, 32>}, {pipeline_mode = #tpu.pipeline_mode<synchronous>, transform_indices = @transform_2, window_bounds = array<i64: 32, 128>}, {pipeline_mode = #tpu.pipeline_mode<synchronous>, transform_indices = @transform_3, window_bounds = array<i64: 32, 128>}, {pipeline_mode = #tpu.pipeline_mode<synchronous>, transform_indices = @transform_4, window_bounds = array<i64: 1, 128>}, {pipeline_mode = #tpu.pipeline_mode<synchronous>, transform_indices = @transform_5, window_bounds = array<i64: 8, 32>}]} {
    %c0 = arith.constant 0 : index
    %c0_0 = arith.constant 0 : index
    %0 = vector.load %arg4[%c0, %c0_0] : memref<32x128xf32, #tpu.memory_space<vmem>>, vector<32x128xf32>
    %c0_1 = arith.constant 0 : index
    %c0_2 = arith.constant 0 : index
    %1 = vector.load %arg5[%c0_1, %c0_2] : memref<32x128xf32, #tpu.memory_space<vmem>>, vector<32x128xf32>
    %c0_3 = arith.constant 0 : index
    %c0_4 = arith.constant 0 : index
    %2 = vector.load %arg6[%c0_3, %c0_4] : memref<1x128xf32, #tpu.memory_space<vmem>>, vector<1x128xf32>
    %c0_5 = arith.constant 0 : index
    %c0_6 = arith.constant 0 : index
    %3 = vector.load %arg3[%c0_5, %c0_6] : memref<1x32xf32, #tpu.memory_space<vmem>>, vector<1x32xf32>
    %c0_i32 = arith.constant 0 : i32
    %4 = arith.index_cast %c0_i32 : i32 to index
    %5 = memref.load %arg1[%4] : memref<8xi32, #tpu.memory_space<smem>>
    %6 = arith.index_cast %5 : i32 to index
    %c0_7 = arith.constant 0 : index
    %7 = vector.load %arg2[%6, %c0_7] : memref<64x32xf32, #tpu.memory_space<vmem>>, vector<1x32xf32>
    %cst = arith.constant dense<0.000000e+00> : vector<1x128xf32>
    %8 = tpu.matmul %7, %0, %cst {dimension_numbers = #tpu.dot_dimension_numbers<[1], [0], [0], [1], [0, 0, 1, 1], [], []>} : vector<1x32xf32>, vector<32x128xf32>, vector<1x128xf32> -> vector<1x128xf32>
    %cst_8 = arith.constant dense<0.000000e+00> : vector<1x128xf32>
    %9 = tpu.matmul %3, %1, %cst_8 {dimension_numbers = #tpu.dot_dimension_numbers<[1], [0], [0], [1], [0, 0, 1, 1], [], []>} : vector<1x32xf32>, vector<32x128xf32>, vector<1x128xf32> -> vector<1x128xf32>
    %10 = arith.addf %8, %9 : vector<1x128xf32>
    %11 = arith.addf %10, %2 : vector<1x128xf32>
    %12 = vector.extract_strided_slice %11 {offsets = [0, 0], sizes = [1, 32], strides = [1, 1]} : vector<1x128xf32> to vector<1x32xf32>
    %13 = arith.negf %12 : vector<1x32xf32>
    %14 = math.exp %13 : vector<1x32xf32>
    %cst_9 = arith.constant 1.000000e+00 : f32
    %15 = vector.broadcast %cst_9 : f32 to vector<1x32xf32>
    %16 = arith.addf %15, %14 : vector<1x32xf32>
    %17 = arith.divf %15, %16 : vector<1x32xf32>
    %18 = vector.extract_strided_slice %11 {offsets = [0, 32], sizes = [1, 32], strides = [1, 1]} : vector<1x128xf32> to vector<1x32xf32>
    %19 = arith.negf %18 : vector<1x32xf32>
    %20 = math.exp %19 : vector<1x32xf32>
    %cst_10 = arith.constant 1.000000e+00 : f32
    %21 = vector.broadcast %cst_10 : f32 to vector<1x32xf32>
    %22 = arith.addf %21, %20 : vector<1x32xf32>
    %23 = arith.divf %21, %22 : vector<1x32xf32>
    %24 = vector.extract_strided_slice %11 {offsets = [0, 64], sizes = [1, 32], strides = [1, 1]} : vector<1x128xf32> to vector<1x32xf32>
    %25 = vector.extract_strided_slice %11 {offsets = [0, 96], sizes = [1, 32], strides = [1, 1]} : vector<1x128xf32> to vector<1x32xf32>
    %26 = arith.mulf %17, %25 : vector<1x32xf32>
    %27 = arith.addf %24, %26 : vector<1x32xf32>
    %28 = math.tanh %27 : vector<1x32xf32>
    %cst_11 = arith.constant 1.000000e+00 : f32
    %29 = vector.broadcast %cst_11 : f32 to vector<1x32xf32>
    %30 = arith.subf %29, %23 : vector<1x32xf32>
    %31 = arith.mulf %30, %28 : vector<1x32xf32>
    %32 = arith.mulf %23, %3 : vector<1x32xf32>
    %33 = arith.addf %31, %32 : vector<1x32xf32>
    %34 = arith.index_cast %c0_i32 : i32 to index
    %c0_12 = arith.constant 0 : index
    %35 = vector.load %arg7[%34, %c0_12] : memref<8x32xf32, #tpu.memory_space<vmem>>, vector<1x32xf32>
    tpu.vector_store %arg7[%34, %c0_12], %33 {strides = array<i32>} : memref<8x32xf32, #tpu.memory_space<vmem>>, vector<1x32xf32>,
    %c1_i32 = arith.constant 1 : i32
    %36 = arith.index_cast %c1_i32 : i32 to index
    %37 = memref.load %arg1[%36] : memref<8xi32, #tpu.memory_space<smem>>
    %38 = arith.index_cast %37 : i32 to index
    %c0_13 = arith.constant 0 : index
    %39 = vector.load %arg2[%38, %c0_13] : memref<64x32xf32, #tpu.memory_space<vmem>>, vector<1x32xf32>
    %cst_14 = arith.constant dense<0.000000e+00> : vector<1x128xf32>
    %40 = tpu.matmul %39, %0, %cst_14 {dimension_numbers = #tpu.dot_dimension_numbers<[1], [0], [0], [1], [0, 0, 1, 1], [], []>} : vector<1x32xf32>, vector<32x128xf32>, vector<1x128xf32> -> vector<1x128xf32>
    %cst_15 = arith.constant dense<0.000000e+00> : vector<1x128xf32>
    %41 = tpu.matmul %33, %1, %cst_15 {dimension_numbers = #tpu.dot_dimension_numbers<[1], [0], [0], [1], [0, 0, 1, 1], [], []>} : vector<1x32xf32>, vector<32x128xf32>, vector<1x128xf32> -> vector<1x128xf32>
    %42 = arith.addf %40, %41 : vector<1x128xf32>
    %43 = arith.addf %42, %2 : vector<1x128xf32>
    %44 = vector.extract_strided_slice %43 {offsets = [0, 0], sizes = [1, 32], strides = [1, 1]} : vector<1x128xf32> to vector<1x32xf32>
    %45 = arith.negf %44 : vector<1x32xf32>
    %46 = math.exp %45 : vector<1x32xf32>
    %cst_16 = arith.constant 1.000000e+00 : f32
    %47 = vector.broadcast %cst_16 : f32 to vector<1x32xf32>
    %48 = arith.addf %47, %46 : vector<1x32xf32>
    %49 = arith.divf %47, %48 : vector<1x32xf32>
    %50 = vector.extract_strided_slice %43 {offsets = [0, 32], sizes = [1, 32], strides = [1, 1]} : vector<1x128xf32> to vector<1x32xf32>
    %51 = arith.negf %50 : vector<1x32xf32>
    %52 = math.exp %51 : vector<1x32xf32>
    %cst_17 = arith.constant 1.000000e+00 : f32
    %53 = vector.broadcast %cst_17 : f32 to vector<1x32xf32>
    %54 = arith.addf %53, %52 : vector<1x32xf32>
    %55 = arith.divf %53, %54 : vector<1x32xf32>
    %56 = vector.extract_strided_slice %43 {offsets = [0, 64], sizes = [1, 32], strides = [1, 1]} : vector<1x128xf32> to vector<1x32xf32>
    %57 = vector.extract_strided_slice %43 {offsets = [0, 96], sizes = [1, 32], strides = [1, 1]} : vector<1x128xf32> to vector<1x32xf32>
    %58 = arith.mulf %49, %57 : vector<1x32xf32>
    %59 = arith.addf %56, %58 : vector<1x32xf32>
    %60 = math.tanh %59 : vector<1x32xf32>
    %cst_18 = arith.constant 1.000000e+00 : f32
    %61 = vector.broadcast %cst_18 : f32 to vector<1x32xf32>
    %62 = arith.subf %61, %55 : vector<1x32xf32>
    %63 = arith.mulf %62, %60 : vector<1x32xf32>
    %64 = arith.mulf %55, %33 : vector<1x32xf32>
    %65 = arith.addf %63, %64 : vector<1x32xf32>
    %66 = arith.index_cast %c1_i32 : i32 to index
    %c0_19 = arith.constant 0 : index
    %67 = vector.load %arg7[%66, %c0_19] : memref<8x32xf32, #tpu.memory_space<vmem>>, vector<1x32xf32>
    tpu.vector_store %arg7[%66, %c0_19], %65 {strides = array<i32>} : memref<8x32xf32, #tpu.memory_space<vmem>>, vector<1x32xf32>,
    %c2_i32 = arith.constant 2 : i32
    %68 = arith.index_cast %c2_i32 : i32 to index
    %69 = memref.load %arg1[%68] : memref<8xi32, #tpu.memory_space<smem>>
    %70 = arith.index_cast %69 : i32 to index
    %c0_20 = arith.constant 0 : index
    %71 = vector.load %arg2[%70, %c0_20] : memref<64x32xf32, #tpu.memory_space<vmem>>, vector<1x32xf32>
    %cst_21 = arith.constant dense<0.000000e+00> : vector<1x128xf32>
    %72 = tpu.matmul %71, %0, %cst_21 {dimension_numbers = #tpu.dot_dimension_numbers<[1], [0], [0], [1], [0, 0, 1, 1], [], []>} : vector<1x32xf32>, vector<32x128xf32>, vector<1x128xf32> -> vector<1x128xf32>
    %cst_22 = arith.constant dense<0.000000e+00> : vector<1x128xf32>
    %73 = tpu.matmul %65, %1, %cst_22 {dimension_numbers = #tpu.dot_dimension_numbers<[1], [0], [0], [1], [0, 0, 1, 1], [], []>} : vector<1x32xf32>, vector<32x128xf32>, vector<1x128xf32> -> vector<1x128xf32>
    %74 = arith.addf %72, %73 : vector<1x128xf32>
    %75 = arith.addf %74, %2 : vector<1x128xf32>
    %76 = vector.extract_strided_slice %75 {offsets = [0, 0], sizes = [1, 32], strides = [1, 1]} : vector<1x128xf32> to vector<1x32xf32>
    %77 = arith.negf %76 : vector<1x32xf32>
    %78 = math.exp %77 : vector<1x32xf32>
    %cst_23 = arith.constant 1.000000e+00 : f32
    %79 = vector.broadcast %cst_23 : f32 to vector<1x32xf32>
    %80 = arith.addf %79, %78 : vector<1x32xf32>
    %81 = arith.divf %79, %80 : vector<1x32xf32>
    %82 = vector.extract_strided_slice %75 {offsets = [0, 32], sizes = [1, 32], strides = [1, 1]} : vector<1x128xf32> to vector<1x32xf32>
    %83 = arith.negf %82 : vector<1x32xf32>
    %84 = math.exp %83 : vector<1x32xf32>
    %cst_24 = arith.constant 1.000000e+00 : f32
    %85 = vector.broadcast %cst_24 : f32 to vector<1x32xf32>
    %86 = arith.addf %85, %84 : vector<1x32xf32>
    %87 = arith.divf %85, %86 : vector<1x32xf32>
    %88 = vector.extract_strided_slice %75 {offsets = [0, 64], sizes = [1, 32], strides = [1, 1]} : vector<1x128xf32> to vector<1x32xf32>
    %89 = vector.extract_strided_slice %75 {offsets = [0, 96], sizes = [1, 32], strides = [1, 1]} : vector<1x128xf32> to vector<1x32xf32>
    %90 = arith.mulf %81, %89 : vector<1x32xf32>
    %91 = arith.addf %88, %90 : vector<1x32xf32>
    %92 = math.tanh %91 : vector<1x32xf32>
    %cst_25 = arith.constant 1.000000e+00 : f32
    %93 = vector.broadcast %cst_25 : f32 to vector<1x32xf32>
    %94 = arith.subf %93, %87 : vector<1x32xf32>
    %95 = arith.mulf %94, %92 : vector<1x32xf32>
    %96 = arith.mulf %87, %65 : vector<1x32xf32>
    %97 = arith.addf %95, %96 : vector<1x32xf32>
    %98 = arith.index_cast %c2_i32 : i32 to index
    %c0_26 = arith.constant 0 : index
    %99 = vector.load %arg7[%98, %c0_26] : memref<8x32xf32, #tpu.memory_space<vmem>>, vector<1x32xf32>
    tpu.vector_store %arg7[%98, %c0_26], %97 {strides = array<i32>} : memref<8x32xf32, #tpu.memory_space<vmem>>, vector<1x32xf32>,
    %c3_i32 = arith.constant 3 : i32
    %100 = arith.index_cast %c3_i32 : i32 to index
    %101 = memref.load %arg1[%100] : memref<8xi32, #tpu.memory_space<smem>>
    %102 = arith.index_cast %101 : i32 to index
    %c0_27 = arith.constant 0 : index
    %103 = vector.load %arg2[%102, %c0_27] : memref<64x32xf32, #tpu.memory_space<vmem>>, vector<1x32xf32>
    %cst_28 = arith.constant dense<0.000000e+00> : vector<1x128xf32>
    %104 = tpu.matmul %103, %0, %cst_28 {dimension_numbers = #tpu.dot_dimension_numbers<[1], [0], [0], [1], [0, 0, 1, 1], [], []>} : vector<1x32xf32>, vector<32x128xf32>, vector<1x128xf32> -> vector<1x128xf32>
    %cst_29 = arith.constant dense<0.000000e+00> : vector<1x128xf32>
    %105 = tpu.matmul %97, %1, %cst_29 {dimension_numbers = #tpu.dot_dimension_numbers<[1], [0], [0], [1], [0, 0, 1, 1], [], []>} : vector<1x32xf32>, vector<32x128xf32>, vector<1x128xf32> -> vector<1x128xf32>
    %106 = arith.addf %104, %105 : vector<1x128xf32>
    %107 = arith.addf %106, %2 : vector<1x128xf32>
    %108 = vector.extract_strided_slice %107 {offsets = [0, 0], sizes = [1, 32], strides = [1, 1]} : vector<1x128xf32> to vector<1x32xf32>
    %109 = arith.negf %108 : vector<1x32xf32>
    %110 = math.exp %109 : vector<1x32xf32>
    %cst_30 = arith.constant 1.000000e+00 : f32
    %111 = vector.broadcast %cst_30 : f32 to vector<1x32xf32>
    %112 = arith.addf %111, %110 : vector<1x32xf32>
    %113 = arith.divf %111, %112 : vector<1x32xf32>
    %114 = vector.extract_strided_slice %107 {offsets = [0, 32], sizes = [1, 32], strides = [1, 1]} : vector<1x128xf32> to vector<1x32xf32>
    %115 = arith.negf %114 : vector<1x32xf32>
    %116 = math.exp %115 : vector<1x32xf32>
    %cst_31 = arith.constant 1.000000e+00 : f32
    %117 = vector.broadcast %cst_31 : f32 to vector<1x32xf32>
    %118 = arith.addf %117, %116 : vector<1x32xf32>
    %119 = arith.divf %117, %118 : vector<1x32xf32>
    %120 = vector.extract_strided_slice %107 {offsets = [0, 64], sizes = [1, 32], strides = [1, 1]} : vector<1x128xf32> to vector<1x32xf32>
    %121 = vector.extract_strided_slice %107 {offsets = [0, 96], sizes = [1, 32], strides = [1, 1]} : vector<1x128xf32> to vector<1x32xf32>
    %122 = arith.mulf %113, %121 : vector<1x32xf32>
    %123 = arith.addf %120, %122 : vector<1x32xf32>
    %124 = math.tanh %123 : vector<1x32xf32>
    %cst_32 = arith.constant 1.000000e+00 : f32
    %125 = vector.broadcast %cst_32 : f32 to vector<1x32xf32>
    %126 = arith.subf %125, %119 : vector<1x32xf32>
    %127 = arith.mulf %126, %124 : vector<1x32xf32>
    %128 = arith.mulf %119, %97 : vector<1x32xf32>
    %129 = arith.addf %127, %128 : vector<1x32xf32>
    %130 = arith.index_cast %c3_i32 : i32 to index
    %c0_33 = arith.constant 0 : index
    %131 = vector.load %arg7[%130, %c0_33] : memref<8x32xf32, #tpu.memory_space<vmem>>, vector<1x32xf32>
    tpu.vector_store %arg7[%130, %c0_33], %129 {strides = array<i32>} : memref<8x32xf32, #tpu.memory_space<vmem>>, vector<1x32xf32>,
    %c4_i32 = arith.constant 4 : i32
    %132 = arith.index_cast %c4_i32 : i32 to index
    %133 = memref.load %arg1[%132] : memref<8xi32, #tpu.memory_space<smem>>
    %134 = arith.index_cast %133 : i32 to index
    %c0_34 = arith.constant 0 : index
    %135 = vector.load %arg2[%134, %c0_34] : memref<64x32xf32, #tpu.memory_space<vmem>>, vector<1x32xf32>
    %cst_35 = arith.constant dense<0.000000e+00> : vector<1x128xf32>
    %136 = tpu.matmul %135, %0, %cst_35 {dimension_numbers = #tpu.dot_dimension_numbers<[1], [0], [0], [1], [0, 0, 1, 1], [], []>} : vector<1x32xf32>, vector<32x128xf32>, vector<1x128xf32> -> vector<1x128xf32>
    %cst_36 = arith.constant dense<0.000000e+00> : vector<1x128xf32>
    %137 = tpu.matmul %129, %1, %cst_36 {dimension_numbers = #tpu.dot_dimension_numbers<[1], [0], [0], [1], [0, 0, 1, 1], [], []>} : vector<1x32xf32>, vector<32x128xf32>, vector<1x128xf32> -> vector<1x128xf32>
    %138 = arith.addf %136, %137 : vector<1x128xf32>
    %139 = arith.addf %138, %2 : vector<1x128xf32>
    %140 = vector.extract_strided_slice %139 {offsets = [0, 0], sizes = [1, 32], strides = [1, 1]} : vector<1x128xf32> to vector<1x32xf32>
    %141 = arith.negf %140 : vector<1x32xf32>
    %142 = math.exp %141 : vector<1x32xf32>
    %cst_37 = arith.constant 1.000000e+00 : f32
    %143 = vector.broadcast %cst_37 : f32 to vector<1x32xf32>
    %144 = arith.addf %143, %142 : vector<1x32xf32>
    %145 = arith.divf %143, %144 : vector<1x32xf32>
    %146 = vector.extract_strided_slice %139 {offsets = [0, 32], sizes = [1, 32], strides = [1, 1]} : vector<1x128xf32> to vector<1x32xf32>
    %147 = arith.negf %146 : vector<1x32xf32>
    %148 = math.exp %147 : vector<1x32xf32>
    %cst_38 = arith.constant 1.000000e+00 : f32
    %149 = vector.broadcast %cst_38 : f32 to vector<1x32xf32>
    %150 = arith.addf %149, %148 : vector<1x32xf32>
    %151 = arith.divf %149, %150 : vector<1x32xf32>
    %152 = vector.extract_strided_slice %139 {offsets = [0, 64], sizes = [1, 32], strides = [1, 1]} : vector<1x128xf32> to vector<1x32xf32>
    %153 = vector.extract_strided_slice %139 {offsets = [0, 96], sizes = [1, 32], strides = [1, 1]} : vector<1x128xf32> to vector<1x32xf32>
    %154 = arith.mulf %145, %153 : vector<1x32xf32>
    %155 = arith.addf %152, %154 : vector<1x32xf32>
    %156 = math.tanh %155 : vector<1x32xf32>
    %cst_39 = arith.constant 1.000000e+00 : f32
    %157 = vector.broadcast %cst_39 : f32 to vector<1x32xf32>
    %158 = arith.subf %157, %151 : vector<1x32xf32>
    %159 = arith.mulf %158, %156 : vector<1x32xf32>
    %160 = arith.mulf %151, %129 : vector<1x32xf32>
    %161 = arith.addf %159, %160 : vector<1x32xf32>
    %162 = arith.index_cast %c4_i32 : i32 to index
    %c0_40 = arith.constant 0 : index
    %163 = vector.load %arg7[%162, %c0_40] : memref<8x32xf32, #tpu.memory_space<vmem>>, vector<1x32xf32>
    tpu.vector_store %arg7[%162, %c0_40], %161 {strides = array<i32>} : memref<8x32xf32, #tpu.memory_space<vmem>>, vector<1x32xf32>,
    %c5_i32 = arith.constant 5 : i32
    %164 = arith.index_cast %c5_i32 : i32 to index
    %165 = memref.load %arg1[%164] : memref<8xi32, #tpu.memory_space<smem>>
    %166 = arith.index_cast %165 : i32 to index
    %c0_41 = arith.constant 0 : index
    %167 = vector.load %arg2[%166, %c0_41] : memref<64x32xf32, #tpu.memory_space<vmem>>, vector<1x32xf32>
    %cst_42 = arith.constant dense<0.000000e+00> : vector<1x128xf32>
    %168 = tpu.matmul %167, %0, %cst_42 {dimension_numbers = #tpu.dot_dimension_numbers<[1], [0], [0], [1], [0, 0, 1, 1], [], []>} : vector<1x32xf32>, vector<32x128xf32>, vector<1x128xf32> -> vector<1x128xf32>
    %cst_43 = arith.constant dense<0.000000e+00> : vector<1x128xf32>
    %169 = tpu.matmul %161, %1, %cst_43 {dimension_numbers = #tpu.dot_dimension_numbers<[1], [0], [0], [1], [0, 0, 1, 1], [], []>} : vector<1x32xf32>, vector<32x128xf32>, vector<1x128xf32> -> vector<1x128xf32>
    %170 = arith.addf %168, %169 : vector<1x128xf32>
    %171 = arith.addf %170, %2 : vector<1x128xf32>
    %172 = vector.extract_strided_slice %171 {offsets = [0, 0], sizes = [1, 32], strides = [1, 1]} : vector<1x128xf32> to vector<1x32xf32>
    %173 = arith.negf %172 : vector<1x32xf32>
    %174 = math.exp %173 : vector<1x32xf32>
    %cst_44 = arith.constant 1.000000e+00 : f32
    %175 = vector.broadcast %cst_44 : f32 to vector<1x32xf32>
    %176 = arith.addf %175, %174 : vector<1x32xf32>
    %177 = arith.divf %175, %176 : vector<1x32xf32>
    %178 = vector.extract_strided_slice %171 {offsets = [0, 32], sizes = [1, 32], strides = [1, 1]} : vector<1x128xf32> to vector<1x32xf32>
    %179 = arith.negf %178 : vector<1x32xf32>
    %180 = math.exp %179 : vector<1x32xf32>
    %cst_45 = arith.constant 1.000000e+00 : f32
    %181 = vector.broadcast %cst_45 : f32 to vector<1x32xf32>
    %182 = arith.addf %181, %180 : vector<1x32xf32>
    %183 = arith.divf %181, %182 : vector<1x32xf32>
    %184 = vector.extract_strided_slice %171 {offsets = [0, 64], sizes = [1, 32], strides = [1, 1]} : vector<1x128xf32> to vector<1x32xf32>
    %185 = vector.extract_strided_slice %171 {offsets = [0, 96], sizes = [1, 32], strides = [1, 1]} : vector<1x128xf32> to vector<1x32xf32>
    %186 = arith.mulf %177, %185 : vector<1x32xf32>
    %187 = arith.addf %184, %186 : vector<1x32xf32>
    %188 = math.tanh %187 : vector<1x32xf32>
    %cst_46 = arith.constant 1.000000e+00 : f32
    %189 = vector.broadcast %cst_46 : f32 to vector<1x32xf32>
    %190 = arith.subf %189, %183 : vector<1x32xf32>
    %191 = arith.mulf %190, %188 : vector<1x32xf32>
    %192 = arith.mulf %183, %161 : vector<1x32xf32>
    %193 = arith.addf %191, %192 : vector<1x32xf32>
    %194 = arith.index_cast %c5_i32 : i32 to index
    %c0_47 = arith.constant 0 : index
    %195 = vector.load %arg7[%194, %c0_47] : memref<8x32xf32, #tpu.memory_space<vmem>>, vector<1x32xf32>
    tpu.vector_store %arg7[%194, %c0_47], %193 {strides = array<i32>} : memref<8x32xf32, #tpu.memory_space<vmem>>, vector<1x32xf32>,
    %c6_i32 = arith.constant 6 : i32
    %196 = arith.index_cast %c6_i32 : i32 to index
    %197 = memref.load %arg1[%196] : memref<8xi32, #tpu.memory_space<smem>>
    %198 = arith.index_cast %197 : i32 to index
    %c0_48 = arith.constant 0 : index
    %199 = vector.load %arg2[%198, %c0_48] : memref<64x32xf32, #tpu.memory_space<vmem>>, vector<1x32xf32>
    %cst_49 = arith.constant dense<0.000000e+00> : vector<1x128xf32>
    %200 = tpu.matmul %199, %0, %cst_49 {dimension_numbers = #tpu.dot_dimension_numbers<[1], [0], [0], [1], [0, 0, 1, 1], [], []>} : vector<1x32xf32>, vector<32x128xf32>, vector<1x128xf32> -> vector<1x128xf32>
    %cst_50 = arith.constant dense<0.000000e+00> : vector<1x128xf32>
    %201 = tpu.matmul %193, %1, %cst_50 {dimension_numbers = #tpu.dot_dimension_numbers<[1], [0], [0], [1], [0, 0, 1, 1], [], []>} : vector<1x32xf32>, vector<32x128xf32>, vector<1x128xf32> -> vector<1x128xf32>
    %202 = arith.addf %200, %201 : vector<1x128xf32>
    %203 = arith.addf %202, %2 : vector<1x128xf32>
    %204 = vector.extract_strided_slice %203 {offsets = [0, 0], sizes = [1, 32], strides = [1, 1]} : vector<1x128xf32> to vector<1x32xf32>
    %205 = arith.negf %204 : vector<1x32xf32>
    %206 = math.exp %205 : vector<1x32xf32>
    %cst_51 = arith.constant 1.000000e+00 : f32
    %207 = vector.broadcast %cst_51 : f32 to vector<1x32xf32>
    %208 = arith.addf %207, %206 : vector<1x32xf32>
    %209 = arith.divf %207, %208 : vector<1x32xf32>
    %210 = vector.extract_strided_slice %203 {offsets = [0, 32], sizes = [1, 32], strides = [1, 1]} : vector<1x128xf32> to vector<1x32xf32>
    %211 = arith.negf %210 : vector<1x32xf32>
    %212 = math.exp %211 : vector<1x32xf32>
    %cst_52 = arith.constant 1.000000e+00 : f32
    %213 = vector.broadcast %cst_52 : f32 to vector<1x32xf32>
    %214 = arith.addf %213, %212 : vector<1x32xf32>
    %215 = arith.divf %213, %214 : vector<1x32xf32>
    %216 = vector.extract_strided_slice %203 {offsets = [0, 64], sizes = [1, 32], strides = [1, 1]} : vector<1x128xf32> to vector<1x32xf32>
    %217 = vector.extract_strided_slice %203 {offsets = [0, 96], sizes = [1, 32], strides = [1, 1]} : vector<1x128xf32> to vector<1x32xf32>
    %218 = arith.mulf %209, %217 : vector<1x32xf32>
    %219 = arith.addf %216, %218 : vector<1x32xf32>
    %220 = math.tanh %219 : vector<1x32xf32>
    %cst_53 = arith.constant 1.000000e+00 : f32
    %221 = vector.broadcast %cst_53 : f32 to vector<1x32xf32>
    %222 = arith.subf %221, %215 : vector<1x32xf32>
    %223 = arith.mulf %222, %220 : vector<1x32xf32>
    %224 = arith.mulf %215, %193 : vector<1x32xf32>
    %225 = arith.addf %223, %224 : vector<1x32xf32>
    %226 = arith.index_cast %c6_i32 : i32 to index
    %c0_54 = arith.constant 0 : index
    %227 = vector.load %arg7[%226, %c0_54] : memref<8x32xf32, #tpu.memory_space<vmem>>, vector<1x32xf32>
    tpu.vector_store %arg7[%226, %c0_54], %225 {strides = array<i32>} : memref<8x32xf32, #tpu.memory_space<vmem>>, vector<1x32xf32>,
    %c7_i32 = arith.constant 7 : i32
    %228 = arith.index_cast %c7_i32 : i32 to index
    %229 = memref.load %arg1[%228] : memref<8xi32, #tpu.memory_space<smem>>
    %230 = arith.index_cast %229 : i32 to index
    %c0_55 = arith.constant 0 : index
    %231 = vector.load %arg2[%230, %c0_55] : memref<64x32xf32, #tpu.memory_space<vmem>>, vector<1x32xf32>
    %cst_56 = arith.constant dense<0.000000e+00> : vector<1x128xf32>
    %232 = tpu.matmul %231, %0, %cst_56 {dimension_numbers = #tpu.dot_dimension_numbers<[1], [0], [0], [1], [0, 0, 1, 1], [], []>} : vector<1x32xf32>, vector<32x128xf32>, vector<1x128xf32> -> vector<1x128xf32>
    %cst_57 = arith.constant dense<0.000000e+00> : vector<1x128xf32>
    %233 = tpu.matmul %225, %1, %cst_57 {dimension_numbers = #tpu.dot_dimension_numbers<[1], [0], [0], [1], [0, 0, 1, 1], [], []>} : vector<1x32xf32>, vector<32x128xf32>, vector<1x128xf32> -> vector<1x128xf32>
    %234 = arith.addf %232, %233 : vector<1x128xf32>
    %235 = arith.addf %234, %2 : vector<1x128xf32>
    %236 = vector.extract_strided_slice %235 {offsets = [0, 0], sizes = [1, 32], strides = [1, 1]} : vector<1x128xf32> to vector<1x32xf32>
    %237 = arith.negf %236 : vector<1x32xf32>
    %238 = math.exp %237 : vector<1x32xf32>
    %cst_58 = arith.constant 1.000000e+00 : f32
    %239 = vector.broadcast %cst_58 : f32 to vector<1x32xf32>
    %240 = arith.addf %239, %238 : vector<1x32xf32>
    %241 = arith.divf %239, %240 : vector<1x32xf32>
    %242 = vector.extract_strided_slice %235 {offsets = [0, 32], sizes = [1, 32], strides = [1, 1]} : vector<1x128xf32> to vector<1x32xf32>
    %243 = arith.negf %242 : vector<1x32xf32>
    %244 = math.exp %243 : vector<1x32xf32>
    %cst_59 = arith.constant 1.000000e+00 : f32
    %245 = vector.broadcast %cst_59 : f32 to vector<1x32xf32>
    %246 = arith.addf %245, %244 : vector<1x32xf32>
    %247 = arith.divf %245, %246 : vector<1x32xf32>
    %248 = vector.extract_strided_slice %235 {offsets = [0, 64], sizes = [1, 32], strides = [1, 1]} : vector<1x128xf32> to vector<1x32xf32>
    %249 = vector.extract_strided_slice %235 {offsets = [0, 96], sizes = [1, 32], strides = [1, 1]} : vector<1x128xf32> to vector<1x32xf32>
    %250 = arith.mulf %241, %249 : vector<1x32xf32>
    %251 = arith.addf %248, %250 : vector<1x32xf32>
    %252 = math.tanh %251 : vector<1x32xf32>
    %cst_60 = arith.constant 1.000000e+00 : f32
    %253 = vector.broadcast %cst_60 : f32 to vector<1x32xf32>
    %254 = arith.subf %253, %247 : vector<1x32xf32>
    %255 = arith.mulf %254, %252 : vector<1x32xf32>
    %256 = arith.mulf %247, %225 : vector<1x32xf32>
    %257 = arith.addf %255, %256 : vector<1x32xf32>
    %258 = arith.index_cast %c7_i32 : i32 to index
    %c0_61 = arith.constant 0 : index
    %259 = vector.load %arg7[%258, %c0_61] : memref<8x32xf32, #tpu.memory_space<vmem>>, vector<1x32xf32>
    tpu.vector_store %arg7[%258, %c0_61], %257 {strides = array<i32>} : memref<8x32xf32, #tpu.memory_space<vmem>>, vector<1x32xf32>,
    %c8_i32 = arith.constant 8 : i32
    return
  }
  func.func @transform_0(%arg0: i32, %arg1: memref<8xi32, #tpu.memory_space<smem>>) -> (i32, i32) {
    %c0_i32 = arith.constant 0 : i32
    %c0_i32_0 = arith.constant 0 : i32
    %c0_i32_1 = arith.constant 0 : i32
    return %c0_i32, %c0_i32_0 : i32, i32
  }
  func.func @transform_1(%arg0: i32, %arg1: memref<8xi32, #tpu.memory_space<smem>>) -> (i32, i32) {
    %c0_i32 = arith.constant 0 : i32
    %c0_i32_0 = arith.constant 0 : i32
    %c0_i32_1 = arith.constant 0 : i32
    return %c0_i32, %c0_i32_0 : i32, i32
  }
  func.func @transform_2(%arg0: i32, %arg1: memref<8xi32, #tpu.memory_space<smem>>) -> (i32, i32) {
    %c0_i32 = arith.constant 0 : i32
    %c0_i32_0 = arith.constant 0 : i32
    %c0_i32_1 = arith.constant 0 : i32
    return %c0_i32, %c0_i32_0 : i32, i32
  }
  func.func @transform_3(%arg0: i32, %arg1: memref<8xi32, #tpu.memory_space<smem>>) -> (i32, i32) {
    %c0_i32 = arith.constant 0 : i32
    %c0_i32_0 = arith.constant 0 : i32
    %c0_i32_1 = arith.constant 0 : i32
    return %c0_i32, %c0_i32_0 : i32, i32
  }
  func.func @transform_4(%arg0: i32, %arg1: memref<8xi32, #tpu.memory_space<smem>>) -> (i32, i32) {
    %c0_i32 = arith.constant 0 : i32
    %c0_i32_0 = arith.constant 0 : i32
    %c0_i32_1 = arith.constant 0 : i32
    return %c0_i32, %c0_i32_0 : i32, i32
  }
  func.func @transform_5(%arg0: i32, %arg1: memref<8xi32, #tpu.memory_space<smem>>) -> (i32, i32) {
    %c0_i32 = arith.constant 0 : i32
    %c0_i32_0 = arith.constant 0 : i32
    %c0_i32_1 = arith.constant 0 : i32
    return %c0_i32, %c0_i32_0 : i32, i32
  }
}

</mosaic_0001>

<bundles_post_ra>
// kernel: tpu_custom_call.1
= control target key start
LH: loop header
LB: loop body
LE: loop exit
PB: predicated region body
PF: predicated region fallthrough
CT: control target
= control target key end

     0   :  { %s932_s24 = smov [#allocation3]   ;;  %s1182_s0 = inlined_call_operand.vmem [shape: s32[8], index: 0, kind: input, shape index: {}]   ;;  %s1183_s1 = inlined_call_operand.vmem [shape: f32[64,32], index: 1, kind: input, shape index: {}]   ;;  %s1184_s2 = inlined_call_operand.vmem [shape: f32[1,32], index: 2, kind: input, shape index: {}]   ;;  %s1185_s3 = inlined_call_operand.vmem [shape: f32[32,128], index: 3, kind: input, shape index: {}]   ;;  %s1186_s4 = inlined_call_operand.vmem [shape: f32[32,128], index: 4, kind: input, shape index: {}]   ;;  %s1187_s5 = inlined_call_operand.vmem [shape: f32[1,128], index: 5, kind: input, shape index: {}]   ;;  %s1188_s6 = inlined_call_operand.hbm [shape: f32[8,32], index: 6, kind: output, shape index: {}]  }
   0x1   :  { %s12_s23 = sshll.u32 %s1182_s0, 4  ;;  %s13_s23 = int_to_ptr.vmem [resolvable:$true] %s12_s23 }
   0x2   :  { %15 = dma.vmem_to_smem %s13_s23, 16, %s932_s24, [#allocation2] }
   0x3   :  { %928 = dma.done.wait [#allocation2], 16 }
   0x4   :  { %929 = vsyncadd [#allocation2], 4294967280 }
   0x5   :  { %18 = sfence }
   0x6   :  { %v978_v0 = vld [vmem:[%s1186_s4 + $0x18] sm:$0xff]  ;;  %v988_v2 = vld [vmem:[%s1186_s4 + $0x10] sm:$0xff]  ;;  %s40_s0 = sld [smem:[#allocation3]]  ;;  %v1000_v4 = vld [vmem:[%s1186_s4 + $0x8] sm:$0xff] }
   0x7   :  { %v983_v1 = vld [vmem:[%s1185_s3 + $0x18] sm:$0xff]  ;;  %59 = vmatpush.msra.mxu0 %v978_v0  ;;  %v995_v3 = vld [vmem:[%s1185_s3 + $0x10] sm:$0xff]  ;;  %v1005_v5 = vld [vmem:[%s1185_s3 + $0x8] sm:$0xff]  ;;  %156 = vmatpush.msra.mxu2 %v978_v0 }
   0x8   :  { %82 = vmatpush.msra.mxu1 %v983_v1  ;;  %179 = vmatpush.msra.mxu3 %v983_v1 }
   0x9   :  { %60 = vmatpush.msra.mxu0 %v988_v2 }
   0xa   :  { %83 = vmatpush.msra.mxu1 %v995_v3 }
   0xb   :  { %19 = vsyncpa [#allocation5], 0  ;;  %v1014_v6 = vld [vmem:[%s1186_s4] sm:$0xff]  ;;  %157 = vmatpush.msra.mxu2 %v988_v2  ;;  %180 = vmatpush.msra.mxu3 %v995_v3  ;;  %vm43_vm0 = vcmask 261120   ;;  %s933_s22 = smov 32   ;;  %s935_s23 = smov 96  }
   0xc   :  { %v1019_v7 = vld [vmem:[%s1185_s3] sm:$0xff]  ;;  %61 = vmatpush.msra.mxu0 %v1000_v4  ;;  %84 = vmatpush.msra.mxu1 %v1005_v5  ;;  %s41_s20 = scalar_lea.vmem %s1183_s1, %s40_s0  ;;  %s810_s26 = sld [smem:[#allocation3 + $0x1]]  ;;  %vm137_vm5 = vcmask 253952  }
   0xd   :  { %v39_v8 = vld [vmem:[%s1184_s2] sm:$0x1]  ;;  %158 = vmatpush.msra.mxu2 %v1000_v4  ;;  %181 = vmatpush.msra.mxu3 %v1005_v5  ;;  %s818_s8 = sld [smem:[#allocation3 + $0x3]] }
   0xe   :  { %62 = vmatpush.msra.mxu0 %v1014_v6  ;;  %85 = vmatpush.msra.mxu1 %v1019_v7  ;;  %v42_v9 = vld [vmem:[%s41_s20] sm:$0x1]  ;;  %s822_s12 = sld [smem:[#allocation3 + $0x4]] }
   0xf   :  { %807 = vmatmul.msk.f32.vlgmr.msra.gmra.mxu0 %vm43_vm0, %v39_v8  ;;  %808 = vmatmul.msk.f32.vlgmr.msra.gmra.mxu1 %vm43_vm0, %v42_v9  ;;  %v1066_v11 = vld [vmem:[%s1187_s5] sm:$0x1]  ;;  %s934_s5 = smov 64   ;;  %s826_s16 = sld [smem:[#allocation3 + $0x5]] }
  0x10   :  { %159 = vmatpush.msra.mxu2 %v1014_v6  ;;  %182 = vmatpush.msra.mxu3 %v1019_v7  ;;  %v843_v33 = vld [vmem:[%s1184_s2] ss:$0 sm:$0xff]  ;;  %s814_s2 = sld [smem:[#allocation3 + $0x2]] }
  0x11   :  { %248 = vmatpush.msrb.mxu0 %v978_v0  ;;  %271 = vmatpush.msrb.mxu1 %v983_v1  ;;  %s830_s19 = sld [smem:[#allocation3 + $0x6]] }
  0x12   :  { %340 = vmatpush.msrb.mxu2 %v978_v0  ;;  %363 = vmatpush.msrb.mxu3 %v983_v1  ;;  %s140_s29 = scalar_lea.vmem %s1183_s1, %s810_s26  ;;  %s834_s24 = sld [smem:[#allocation3 + $0x7]] }
  0x13   :  { %249 = vmatpush.msrb.mxu0 %v988_v2  ;;  %272 = vmatpush.msrb.mxu1 %v995_v3  ;;  %v141_v40 = vld [vmem:[%s140_s29] sm:$0x1]  ;;  %s324_s11 = scalar_lea.vmem %s1183_s1, %s818_s8 }
  0x14   :  { %341 = vmatpush.msrb.mxu2 %v988_v2  ;;  %364 = vmatpush.msrb.mxu3 %v995_v3  ;;  %s416_s15 = scalar_lea.vmem %s1183_s1, %s822_s12 }
  0x15   :  { %250 = vmatpush.msrb.mxu0 %v1000_v4  ;;  %273 = vmatpush.msrb.mxu1 %v1005_v5  ;;  %s508_s4 = scalar_lea.vmem %s1183_s1, %s826_s16 }
  0x16   :  { %342 = vmatpush.msrb.mxu2 %v1000_v4  ;;  %365 = vmatpush.msrb.mxu3 %v1005_v5  ;;  %s232_s7 = scalar_lea.vmem %s1183_s1, %s814_s2  ;;  %s790_s2 = sshll.u32 %s1188_s6, 4  ;;  %s791_s2 = int_to_ptr.hbm [resolvable:$true] %s790_s2 }
  0x17   :  { %251 = vmatpush.msrb.mxu0 %v1014_v6  ;;  %274 = vmatpush.msrb.mxu1 %v1019_v7  ;;  %s600_s21 = scalar_lea.vmem %s1183_s1, %s830_s19 }
  0x18   :  { %343 = vmatpush.msrb.mxu2 %v1014_v6  ;;  %366 = vmatpush.msrb.mxu3 %v1019_v7  ;;  %s692_s27 = scalar_lea.vmem %s1183_s1, %s834_s24  ;;  %s936_s1 = smov [#allocation4]  }
  0x19   :  { %432 = vmatpush.msra.mxu0 %v978_v0  ;;  %455 = vmatpush.msra.mxu1 %v983_v1 }
  0x1a   :  { %812 = vmatmul.msk.f32.vlgmr.msra.gmra.mxu3 %vm43_vm0, %v141_v40 }
  0x1b   :  { %433 = vmatpush.msra.mxu0 %v988_v2  ;;  %456 = vmatpush.msra.mxu1 %v995_v3 }
  0x1c   :  { %547 = vmatpush.msra.mxu3 %v983_v1 }
  0x1d   :  { %434 = vmatpush.msra.mxu0 %v1000_v4  ;;  %457 = vmatpush.msra.mxu1 %v1005_v5 }
  0x1e   :  { %548 = vmatpush.msra.mxu3 %v995_v3 }
  0x1f   :  { %435 = vmatpush.msra.mxu0 %v1014_v6  ;;  %458 = vmatpush.msra.mxu1 %v1019_v7 }
  0x20   :  { %549 = vmatpush.msra.mxu3 %v1005_v5 }
  0x22   :  { %550 = vmatpush.msra.mxu3 %v1019_v7 }
  0x8c   :  { %v64_v10 = vpop.f32.mrf.mxu0  ;;  %v87_v12 = vpop.f32.mrf.mxu1 }
  0x8d   :  { %v88_v13 = vadd.f32 %v87_v12, %v64_v10 }
  0x8f   :  { %v90_v14 = vadd.f32 %v88_v13, %v1066_v11 }
  0x91   :  { %111 = vrot.lane.b32.xlu0 %v90_v14, %s933_s22  ;;  %v809_v15 = vmul.f32 -1.442695, %v90_v14 }
  0x93   :  { %844 = vpow2.f32 %v809_v15 }
  0x99   :  { %v845_v16 = vpop.eup %844 }
  0x9a   :  { %v94_v17 = vadd.f32 1.0, %v845_v16 }
  0x9c   :  { %846 = vrcp.f32 %v94_v17  ;;  %v106_v23 = vand.u32 2147483648, %v94_v17  ;;  %vm100_vm2 = vweird.f32 %v94_v17  ;;  %v104_v24 = vand.u32 2147483647, %v94_v17 }
  0x9d   :  { %v184_v42 = vpop.f32.mrf.mxu3 }
  0x9e   :  { %v107_v26 = vor.u32 1.1754944e-38, %v106_v23  ;;  %vm105_vm4 = vcmp.eq.f32.partialorder %v104_v24, 8.507059e+37 }
  0xa2   :  { %v847_v18 = vpop.eup %846 }
  0xa3   :  { %v96_v19 = vmul.f32 %v847_v18, %v94_v17  ;;  %vm101_vm1 = vweird.f32 %v847_v18 }
  0xa4   :  { %vm102_vm3 = vmor %vm100_vm2, %vm101_vm1 }
  0xa5   :  { %v97_v20 = vsub.f32 1.0, %v96_v19 }
  0xa7   :  { %v98_v21 = vmul.f32 %v847_v18, %v97_v20 }
  0xa9   :  { %v99_v22 = vadd.f32 %v847_v18, %v98_v21 }
  0xab   :  { %v103_v25 = vsel %vm102_vm3, %v847_v18, %v99_v22 }
  0xac   :  { %v108_v28 = vsel %vm105_vm4, %v107_v26, %v103_v25 }
  0xad   :  { %v121_v35 = vsub.f32 1.0, %v108_v28 }
 0x103   :  { %v112_v27 = vpop.permute.xlu0 %111 }
 0x104   :  { %v114_v29 = vmul.f32 %v112_v27, %v108_v28 }
 0x106   :  { %116 = vrot.lane.b32.xlu0 %v114_v29, %s934_s5 }
 0x178   :  { %v117_v30 = vpop.permute.xlu0 %116 }
 0x179   :  { %v119_v31 = vadd.f32 %v117_v30, %v90_v14  ;;  %v233_v14 = vld [vmem:[%s232_s7] sm:$0x1] }
 0x17a   :  { %816 = vmatmul.msk.f32.vlgmr.msrb.gmra.mxu1 %vm43_vm0, %v233_v14 }
 0x17b   :  { %848 = vtanh.f32 %v119_v31  ;;  %639 = vmatpush.msrb.mxu1 %v983_v1 }
 0x17d   :  { %640 = vmatpush.msrb.mxu1 %v995_v3 }
 0x17f   :  { %641 = vmatpush.msrb.mxu1 %v1005_v5 }
 0x181   :  { %v849_v32 = vpop.eup %848  ;;  %642 = vmatpush.msrb.mxu1 %v1019_v7 }
 0x182   :  { %123 = vrot.lane.b32.xlu1 %v849_v32, %s935_s23 }
 0x18a   :  { %128 = vrot.lane.b32.xlu1 %v843_v33, %s933_s22 }
 0x1f4   :  { %v124_v34 = vpop.permute.xlu1 %123 }
 0x1f5   :  { %v126_v37 = vmul.f32 %v124_v34, %v121_v35 }
 0x1f7   :  { %v276_v16 = vpop.f32.mrf.mxu1 }
 0x1fc   :  { %v129_v36 = vpop.permute.xlu1 %128 }
 0x1fd   :  { %v131_v38 = vmul.f32 %v129_v36, %v108_v28 }
 0x1ff   :  { %v132_v39 = vadd.f32 %v131_v38, %v126_v37 }
 0x201   :  { %134 = vrot.lane.b32.xlu2 %v132_v39, %s935_s23 }
 0x25b   :  { %v135_v41 = vpop.permute.xlu2 %134 }
 0x25c   :  { %138 = vst.msk [vmem:[#allocation4] sm:$0x1] %vm137_vm5, %v135_v41  ;;  %811 = vmatmul.msk.f32.vlgmr.msra.gmra.mxu2 %vm43_vm0, %v135_v41 }
 0x25d   :  { %524 = vmatpush.msra.mxu2 %v978_v0 }
 0x25f   :  { %525 = vmatpush.msra.mxu2 %v988_v2 }
 0x261   :  { %526 = vmatpush.msra.mxu2 %v1000_v4 }
 0x263   :  { %527 = vmatpush.msra.mxu2 %v1014_v6 }
 0x2df   :  { %v161_v43 = vpop.f32.mrf.mxu2 }
 0x2e0   :  { %v185_v44 = vadd.f32 %v184_v42, %v161_v43  ;;  %v325_v43 = vld [vmem:[%s324_s11] sm:$0x1] }
 0x2e1   :  { %820 = vmatmul.msk.f32.vlgmr.msrb.gmra.mxu3 %vm43_vm0, %v325_v43 }
 0x2e2   :  { %v187_v45 = vadd.f32 %v185_v44, %v1066_v11  ;;  %731 = vmatpush.msrb.mxu3 %v983_v1 }
 0x2e4   :  { %208 = vrot.lane.b32.xlu2 %v187_v45, %s933_s22  ;;  %v813_v46 = vmul.f32 -1.442695, %v187_v45  ;;  %732 = vmatpush.msrb.mxu3 %v995_v3 }
 0x2e6   :  { %850 = vpow2.f32 %v813_v46  ;;  %733 = vmatpush.msrb.mxu3 %v1005_v5 }
 0x2e8   :  { %734 = vmatpush.msrb.mxu3 %v1019_v7 }
 0x2ec   :  { %v851_v47 = vpop.eup %850 }
 0x2ed   :  { %v191_v48 = vadd.f32 1.0, %v851_v47 }
 0x2ef   :  { %852 = vrcp.f32 %v191_v48  ;;  %v203_v54 = vand.u32 2147483648, %v191_v48  ;;  %vm197_vm7 = vweird.f32 %v191_v48  ;;  %v201_v55 = vand.u32 2147483647, %v191_v48 }
 0x2f1   :  { %v204_v57 = vor.u32 1.1754944e-38, %v203_v54  ;;  %vm202_vm9 = vcmp.eq.f32.partialorder %v201_v55, 8.507059e+37 }
 0x2f5   :  { %v853_v49 = vpop.eup %852 }
 0x2f6   :  { %v193_v50 = vmul.f32 %v853_v49, %v191_v48  ;;  %vm198_vm6 = vweird.f32 %v853_v49 }
 0x2f7   :  { %vm199_vm8 = vmor %vm197_vm7, %vm198_vm6 }
 0x2f8   :  { %v194_v51 = vsub.f32 1.0, %v193_v50 }
 0x2fa   :  { %v195_v52 = vmul.f32 %v853_v49, %v194_v51 }
 0x2fc   :  { %v196_v53 = vadd.f32 %v853_v49, %v195_v52 }
 0x2fe   :  { %v200_v56 = vsel %vm199_vm8, %v853_v49, %v196_v53 }
 0x2ff   :  { %v205_v59 = vsel %vm202_vm9, %v204_v57, %v200_v56 }
 0x300   :  { %v218_v8 = vsub.f32 1.0, %v205_v59  ;;  %v224_v10 = vmul.f32 %v205_v59, %v132_v39 }
 0x33e   :  { %v209_v58 = vpop.permute.xlu2 %208 }
 0x33f   :  { %v211_v60 = vmul.f32 %v209_v58, %v205_v59 }
 0x341   :  { %213 = vrot.lane.b32.xlu0 %v211_v60, %s934_s5 }
 0x364   :  { %v368_v1 = vpop.f32.mrf.mxu3 }
 0x3b3   :  { %v214_v61 = vpop.permute.xlu0 %213 }
 0x3b4   :  { %v216_v62 = vadd.f32 %v214_v61, %v187_v45 }
 0x3b6   :  { %854 = vtanh.f32 %v216_v62 }
 0x3bc   :  { %v855_v63 = vpop.eup %854 }
 0x3bd   :  { %220 = vrot.lane.b32.xlu1 %v855_v63, %s935_s23 }
 0x42f   :  { %v221_v9 = vpop.permute.xlu1 %220 }
 0x430   :  { %v223_v12 = vmul.f32 %v221_v9, %v218_v8  ;;  %v417_v8 = vld [vmem:[%s416_s15] sm:$0x1] }
 0x431   :  { %824 = vmatmul.msk.f32.vlgmr.msra.gmra.mxu1 %vm43_vm0, %v417_v8 }
 0x432   :  { %v225_v13 = vadd.f32 %v224_v10, %v223_v12 }
 0x434   :  { %227 = vrot.lane.b32.xlu2 %v225_v13, %s935_s23 }
 0x48e   :  { %v228_v15 = vpop.permute.xlu2 %227 }
 0x48f   :  { %230 = vst.msk [vmem:[#allocation4 + $0x1] sm:$0x1] %vm137_vm5, %v228_v15  ;;  %815 = vmatmul.msk.f32.vlgmr.msrb.gmra.mxu0 %vm43_vm0, %v228_v15 }
 0x490   :  { %616 = vmatpush.msrb.mxu0 %v978_v0 }
 0x492   :  { %617 = vmatpush.msrb.mxu0 %v988_v2 }
 0x494   :  { %618 = vmatpush.msrb.mxu0 %v1000_v4 }
 0x496   :  { %619 = vmatpush.msrb.mxu0 %v1014_v6 }
 0x4ae   :  { %v460_v10 = vpop.f32.mrf.mxu1 }
 0x50c   :  { %v253_v17 = vpop.f32.mrf.mxu0 }
 0x50d   :  { %v277_v18 = vadd.f32 %v276_v16, %v253_v17 }
 0x50f   :  { %v279_v19 = vadd.f32 %v277_v18, %v1066_v11 }
 0x511   :  { %300 = vrot.lane.b32.xlu0 %v279_v19, %s933_s22  ;;  %v817_v20 = vmul.f32 -1.442695, %v279_v19 }
 0x513   :  { %856 = vpow2.f32 %v817_v20 }
 0x519   :  { %v857_v21 = vpop.eup %856 }
 0x51a   :  { %v283_v22 = vadd.f32 1.0, %v857_v21 }
 0x51c   :  { %858 = vrcp.f32 %v283_v22  ;;  %v295_v28 = vand.u32 2147483648, %v283_v22  ;;  %vm289_vm11 = vweird.f32 %v283_v22  ;;  %v293_v29 = vand.u32 2147483647, %v283_v22 }
 0x51e   :  { %v296_v31 = vor.u32 1.1754944e-38, %v295_v28  ;;  %vm294_vm13 = vcmp.eq.f32.partialorder %v293_v29, 8.507059e+37 }
 0x522   :  { %v859_v23 = vpop.eup %858 }
 0x523   :  { %v285_v24 = vmul.f32 %v859_v23, %v283_v22  ;;  %vm290_vm10 = vweird.f32 %v859_v23 }
 0x524   :  { %vm291_vm12 = vmor %vm289_vm11, %vm290_vm10 }
 0x525   :  { %v286_v25 = vsub.f32 1.0, %v285_v24 }
 0x527   :  { %v287_v26 = vmul.f32 %v859_v23, %v286_v25 }
 0x529   :  { %v288_v27 = vadd.f32 %v859_v23, %v287_v26 }
 0x52b   :  { %v292_v30 = vsel %vm291_vm12, %v859_v23, %v288_v27 }
 0x52c   :  { %v297_v33 = vsel %vm294_vm13, %v296_v31, %v292_v30 }
 0x52d   :  { %v310_v38 = vsub.f32 1.0, %v297_v33  ;;  %v316_v40 = vmul.f32 %v297_v33, %v225_v13 }
 0x583   :  { %v301_v32 = vpop.permute.xlu0 %300 }
 0x584   :  { %v303_v34 = vmul.f32 %v301_v32, %v297_v33 }
 0x586   :  { %305 = vrot.lane.b32.xlu1 %v303_v34, %s934_s5 }
 0x5f8   :  { %v306_v35 = vpop.permute.xlu1 %305 }
 0x5f9   :  { %v308_v36 = vadd.f32 %v306_v35, %v279_v19 }
 0x5fb   :  { %860 = vtanh.f32 %v308_v36 }
 0x601   :  { %v861_v37 = vpop.eup %860 }
 0x602   :  { %312 = vrot.lane.b32.xlu2 %v861_v37, %s935_s23 }
 0x65c   :  { %v313_v39 = vpop.permute.xlu2 %312 }
 0x65d   :  { %v315_v41 = vmul.f32 %v313_v39, %v310_v38  ;;  %v509_v38 = vld [vmem:[%s508_s4] sm:$0x1] }
 0x65e   :  { %828 = vmatmul.msk.f32.vlgmr.msra.gmra.mxu3 %vm43_vm0, %v509_v38 }
 0x65f   :  { %v317_v42 = vadd.f32 %v316_v40, %v315_v41 }
 0x661   :  { %319 = vrot.lane.b32.xlu0 %v317_v42, %s935_s23 }
 0x6d3   :  { %v320_v44 = vpop.permute.xlu0 %319 }
 0x6d4   :  { %322 = vst.msk [vmem:[#allocation4 + $0x2] sm:$0x1] %vm137_vm5, %v320_v44  ;;  %819 = vmatmul.msk.f32.vlgmr.msrb.gmra.mxu2 %vm43_vm0, %v320_v44 }
 0x6d5   :  { %708 = vmatpush.msrb.mxu2 %v978_v0 }
 0x6d7   :  { %709 = vmatpush.msrb.mxu2 %v988_v2 }
 0x6d9   :  { %710 = vmatpush.msrb.mxu2 %v1000_v4 }
 0x6db   :  { %711 = vmatpush.msrb.mxu2 %v1014_v6 }
 0x6e1   :  { %v552_v40 = vpop.f32.mrf.mxu3 }
 0x757   :  { %v345_v45 = vpop.f32.mrf.mxu2 }
 0x758   :  { %v369_v3 = vadd.f32 %v368_v1, %v345_v45 }
 0x75a   :  { %v371_v5 = vadd.f32 %v369_v3, %v1066_v11 }
 0x75c   :  { %392 = vrot.lane.b32.xlu1 %v371_v5, %s933_s22  ;;  %v821_v7 = vmul.f32 -1.442695, %v371_v5 }
 0x75e   :  { %862 = vpow2.f32 %v821_v7 }
 0x764   :  { %v863_v46 = vpop.eup %862 }
 0x765   :  { %v375_v47 = vadd.f32 1.0, %v863_v46 }
 0x767   :  { %864 = vrcp.f32 %v375_v47  ;;  %v387_v4 = vand.u32 2147483648, %v375_v47  ;;  %vm381_vm15 = vweird.f32 %v375_v47  ;;  %v385_v6 = vand.u32 2147483647, %v375_v47 }
 0x769   :  { %v388_v52 = vor.u32 1.1754944e-38, %v387_v4  ;;  %vm386_vm2 = vcmp.eq.f32.partialorder %v385_v6, 8.507059e+37 }
 0x76d   :  { %v865_v48 = vpop.eup %864 }
 0x76e   :  { %v377_v0 = vmul.f32 %v865_v48, %v375_v47  ;;  %vm382_vm14 = vweird.f32 %v865_v48 }
 0x76f   :  { %vm383_vm1 = vmor %vm381_vm15, %vm382_vm14 }
 0x770   :  { %v378_v49 = vsub.f32 1.0, %v377_v0 }
 0x772   :  { %v379_v2 = vmul.f32 %v865_v48, %v378_v49 }
 0x774   :  { %v380_v50 = vadd.f32 %v865_v48, %v379_v2 }
 0x776   :  { %v384_v51 = vsel %vm383_vm1, %v865_v48, %v380_v50 }
 0x777   :  { %v389_v54 = vsel %vm386_vm2, %v388_v52, %v384_v51 }
 0x778   :  { %v402_v59 = vsub.f32 1.0, %v389_v54  ;;  %v408_v61 = vmul.f32 %v389_v54, %v317_v42 }
 0x7ce   :  { %v393_v53 = vpop.permute.xlu1 %392 }
 0x7cf   :  { %v395_v55 = vmul.f32 %v393_v53, %v389_v54 }
 0x7d1   :  { %397 = vrot.lane.b32.xlu2 %v395_v55, %s934_s5 }
 0x82b   :  { %v398_v56 = vpop.permute.xlu2 %397 }
 0x82c   :  { %v400_v57 = vadd.f32 %v398_v56, %v371_v5 }
 0x82e   :  { %866 = vtanh.f32 %v400_v57 }
 0x834   :  { %v867_v58 = vpop.eup %866 }
 0x835   :  { %404 = vrot.lane.b32.xlu0 %v867_v58, %s935_s23 }
 0x8a7   :  { %v405_v60 = vpop.permute.xlu0 %404 }
 0x8a8   :  { %v407_v62 = vmul.f32 %v405_v60, %v402_v59  ;;  %v601_v59 = vld [vmem:[%s600_s21] sm:$0x1] }
 0x8a9   :  { %832 = vmatmul.msk.f32.vlgmr.msrb.gmra.mxu1 %vm43_vm0, %v601_v59 }
 0x8aa   :  { %v409_v63 = vadd.f32 %v408_v61, %v407_v62 }
 0x8ac   :  { %411 = vrot.lane.b32.xlu1 %v409_v63, %s935_s23 }
 0x91e   :  { %v412_v9 = vpop.permute.xlu1 %411 }
 0x91f   :  { %414 = vst.msk [vmem:[#allocation4 + $0x3] sm:$0x1] %vm137_vm5, %v412_v9  ;;  %823 = vmatmul.msk.f32.vlgmr.msra.gmra.mxu0 %vm43_vm0, %v412_v9 }
 0x926   :  { %v644_v61 = vpop.f32.mrf.mxu1 }
 0x99c   :  { %v437_v12 = vpop.f32.mrf.mxu0 }
 0x99d   :  { %v461_v13 = vadd.f32 %v460_v10, %v437_v12 }
 0x99f   :  { %v463_v14 = vadd.f32 %v461_v13, %v1066_v11 }
 0x9a1   :  { %484 = vrot.lane.b32.xlu2 %v463_v14, %s933_s22  ;;  %v825_v15 = vmul.f32 -1.442695, %v463_v14 }
 0x9a3   :  { %868 = vpow2.f32 %v825_v15 }
 0x9a9   :  { %v869_v16 = vpop.eup %868 }
 0x9aa   :  { %v467_v17 = vadd.f32 1.0, %v869_v16 }
 0x9ac   :  { %870 = vrcp.f32 %v467_v17  ;;  %v479_v23 = vand.u32 2147483648, %v467_v17  ;;  %vm473_vm4 = vweird.f32 %v467_v17  ;;  %v477_v24 = vand.u32 2147483647, %v467_v17 }
 0x9ae   :  { %v480_v26 = vor.u32 1.1754944e-38, %v479_v23  ;;  %vm478_vm7 = vcmp.eq.f32.partialorder %v477_v24, 8.507059e+37 }
 0x9b2   :  { %v871_v18 = vpop.eup %870 }
 0x9b3   :  { %v469_v19 = vmul.f32 %v871_v18, %v467_v17  ;;  %vm474_vm3 = vweird.f32 %v871_v18 }
 0x9b4   :  { %vm475_vm6 = vmor %vm473_vm4, %vm474_vm3 }
 0x9b5   :  { %v470_v20 = vsub.f32 1.0, %v469_v19 }
 0x9b7   :  { %v471_v21 = vmul.f32 %v871_v18, %v470_v20 }
 0x9b9   :  { %v472_v22 = vadd.f32 %v871_v18, %v471_v21 }
 0x9bb   :  { %v476_v25 = vsel %vm475_vm6, %v871_v18, %v472_v22 }
 0x9bc   :  { %v481_v28 = vsel %vm478_vm7, %v480_v26, %v476_v25 }
 0x9bd   :  { %v494_v33 = vsub.f32 1.0, %v481_v28  ;;  %v500_v35 = vmul.f32 %v481_v28, %v409_v63 }
 0x9fb   :  { %v485_v27 = vpop.permute.xlu2 %484 }
 0x9fc   :  { %v487_v29 = vmul.f32 %v485_v27, %v481_v28 }
 0x9fe   :  { %489 = vrot.lane.b32.xlu0 %v487_v29, %s934_s5 }
 0xa70   :  { %v490_v30 = vpop.permute.xlu0 %489 }
 0xa71   :  { %v492_v31 = vadd.f32 %v490_v30, %v463_v14 }
 0xa73   :  { %872 = vtanh.f32 %v492_v31 }
 0xa79   :  { %v873_v32 = vpop.eup %872 }
 0xa7a   :  { %496 = vrot.lane.b32.xlu1 %v873_v32, %s935_s23 }
 0xaec   :  { %v497_v34 = vpop.permute.xlu1 %496 }
 0xaed   :  { %v499_v36 = vmul.f32 %v497_v34, %v494_v33  ;;  %v693_v33 = vld [vmem:[%s692_s27] sm:$0x1] }
 0xaee   :  { %836 = vmatmul.msk.f32.vlgmr.msrb.gmra.mxu3 %vm43_vm0, %v693_v33 }
 0xaef   :  { %v501_v37 = vadd.f32 %v500_v35, %v499_v36 }
 0xaf1   :  { %503 = vrot.lane.b32.xlu2 %v501_v37, %s935_s23 }
 0xb4b   :  { %v504_v39 = vpop.permute.xlu2 %503 }
 0xb4c   :  { %506 = vst.msk [vmem:[#allocation4 + $0x4] sm:$0x1] %vm137_vm5, %v504_v39  ;;  %827 = vmatmul.msk.f32.vlgmr.msra.gmra.mxu2 %vm43_vm0, %v504_v39 }
 0xb71   :  { %v736_v35 = vpop.f32.mrf.mxu3 }
 0xbcf   :  { %v529_v41 = vpop.f32.mrf.mxu2 }
 0xbd0   :  { %v553_v42 = vadd.f32 %v552_v40, %v529_v41 }
 0xbd2   :  { %v555_v43 = vadd.f32 %v553_v42, %v1066_v11 }
 0xbd4   :  { %576 = vrot.lane.b32.xlu0 %v555_v43, %s933_s22  ;;  %v829_v44 = vmul.f32 -1.442695, %v555_v43 }
 0xbd6   :  { %874 = vpow2.f32 %v829_v44 }
 0xbdc   :  { %v875_v1 = vpop.eup %874 }
 0xbdd   :  { %v559_v45 = vadd.f32 1.0, %v875_v1 }
 0xbdf   :  { %876 = vrcp.f32 %v559_v45  ;;  %v571_v48 = vand.u32 2147483648, %v559_v45  ;;  %vm565_vm9 = vweird.f32 %v559_v45  ;;  %v569_v0 = vand.u32 2147483647, %v559_v45 }
 0xbe1   :  { %v572_v2 = vor.u32 1.1754944e-38, %v571_v48  ;;  %vm570_vm11 = vcmp.eq.f32.partialorder %v569_v0, 8.507059e+37 }
 0xbe5   :  { %v877_v3 = vpop.eup %876 }
 0xbe6   :  { %v561_v5 = vmul.f32 %v877_v3, %v559_v45  ;;  %vm566_vm8 = vweird.f32 %v877_v3 }
 0xbe7   :  { %vm567_vm10 = vmor %vm565_vm9, %vm566_vm8 }
 0xbe8   :  { %v562_v7 = vsub.f32 1.0, %v561_v5 }
 0xbea   :  { %v563_v46 = vmul.f32 %v877_v3, %v562_v7 }
 0xbec   :  { %v564_v47 = vadd.f32 %v877_v3, %v563_v46 }
 0xbee   :  { %v568_v49 = vsel %vm567_vm10, %v877_v3, %v564_v47 }
 0xbef   :  { %v573_v4 = vsel %vm570_vm11, %v572_v2, %v568_v49 }
 0xbf0   :  { %v586_v54 = vsub.f32 1.0, %v573_v4  ;;  %v592_v56 = vmul.f32 %v573_v4, %v501_v37 }
 0xc46   :  { %v577_v50 = vpop.permute.xlu0 %576 }
 0xc47   :  { %v579_v6 = vmul.f32 %v577_v50, %v573_v4 }
 0xc49   :  { %581 = vrot.lane.b32.xlu1 %v579_v6, %s934_s5 }
 0xcbb   :  { %v582_v51 = vpop.permute.xlu1 %581 }
 0xcbc   :  { %v584_v52 = vadd.f32 %v582_v51, %v555_v43 }
 0xcbe   :  { %878 = vtanh.f32 %v584_v52 }
 0xcc4   :  { %v879_v53 = vpop.eup %878 }
 0xcc5   :  { %588 = vrot.lane.b32.xlu2 %v879_v53, %s935_s23 }
 0xd1f   :  { %v589_v55 = vpop.permute.xlu2 %588 }
 0xd20   :  { %v591_v57 = vmul.f32 %v589_v55, %v586_v54 }
 0xd22   :  { %v593_v58 = vadd.f32 %v592_v56, %v591_v57 }
 0xd24   :  { %595 = vrot.lane.b32.xlu0 %v593_v58, %s935_s23 }
 0xd96   :  { %v596_v60 = vpop.permute.xlu0 %595 }
 0xd97   :  { %598 = vst.msk [vmem:[#allocation4 + $0x5] sm:$0x1] %vm137_vm5, %v596_v60  ;;  %831 = vmatmul.msk.f32.vlgmr.msrb.gmra.mxu0 %vm43_vm0, %v596_v60 }
 0xe14   :  { %v621_v62 = vpop.f32.mrf.mxu0 }
 0xe15   :  { %v645_v63 = vadd.f32 %v644_v61, %v621_v62 }
 0xe17   :  { %v647_v8 = vadd.f32 %v645_v63, %v1066_v11 }
 0xe19   :  { %668 = vrot.lane.b32.xlu1 %v647_v8, %s933_s22  ;;  %v833_v9 = vmul.f32 -1.442695, %v647_v8 }
 0xe1b   :  { %880 = vpow2.f32 %v833_v9 }
 0xe21   :  { %v881_v10 = vpop.eup %880 }
 0xe22   :  { %v651_v12 = vadd.f32 1.0, %v881_v10 }
 0xe24   :  { %882 = vrcp.f32 %v651_v12  ;;  %v663_v18 = vand.u32 2147483648, %v651_v12  ;;  %vm657_vm13 = vweird.f32 %v651_v12  ;;  %v661_v19 = vand.u32 2147483647, %v651_v12 }
 0xe26   :  { %v664_v21 = vor.u32 1.1754944e-38, %v663_v18  ;;  %vm662_vm15 = vcmp.eq.f32.partialorder %v661_v19, 8.507059e+37 }
 0xe2a   :  { %v883_v13 = vpop.eup %882 }
 0xe2b   :  { %v653_v14 = vmul.f32 %v883_v13, %v651_v12  ;;  %vm658_vm12 = vweird.f32 %v883_v13 }
 0xe2c   :  { %vm659_vm14 = vmor %vm657_vm13, %vm658_vm12 }
 0xe2d   :  { %v654_v15 = vsub.f32 1.0, %v653_v14 }
 0xe2f   :  { %v655_v16 = vmul.f32 %v883_v13, %v654_v15 }
 0xe31   :  { %v656_v17 = vadd.f32 %v883_v13, %v655_v16 }
 0xe33   :  { %v660_v20 = vsel %vm659_vm14, %v883_v13, %v656_v17 }
 0xe34   :  { %v665_v23 = vsel %vm662_vm15, %v664_v21, %v660_v20 }
 0xe35   :  { %v678_v28 = vsub.f32 1.0, %v665_v23  ;;  %v684_v30 = vmul.f32 %v665_v23, %v593_v58 }
 0xe8b   :  { %v669_v22 = vpop.permute.xlu1 %668 }
 0xe8c   :  { %v671_v24 = vmul.f32 %v669_v22, %v665_v23 }
 0xe8e   :  { %673 = vrot.lane.b32.xlu2 %v671_v24, %s934_s5 }
 0xee8   :  { %v674_v25 = vpop.permute.xlu2 %673 }
 0xee9   :  { %v676_v26 = vadd.f32 %v674_v25, %v647_v8 }
 0xeeb   :  { %884 = vtanh.f32 %v676_v26 }
 0xef1   :  { %v885_v27 = vpop.eup %884 }
 0xef2   :  { %680 = vrot.lane.b32.xlu0 %v885_v27, %s935_s23 }
 0xf64   :  { %v681_v29 = vpop.permute.xlu0 %680 }
 0xf65   :  { %v683_v31 = vmul.f32 %v681_v29, %v678_v28 }
 0xf67   :  { %v685_v32 = vadd.f32 %v684_v30, %v683_v31 }
 0xf69   :  { %687 = vrot.lane.b32.xlu1 %v685_v32, %s935_s23 }
 0xfdb   :  { %v688_v34 = vpop.permute.xlu1 %687 }
 0xfdc   :  { %690 = vst.msk [vmem:[#allocation4 + $0x6] sm:$0x1] %vm137_vm5, %v688_v34  ;;  %835 = vmatmul.msk.f32.vlgmr.msrb.gmra.mxu2 %vm43_vm0, %v688_v34 }
0x105f   :  { %v713_v36 = vpop.f32.mrf.mxu2 }
0x1060   :  { %v737_v37 = vadd.f32 %v736_v35, %v713_v36 }
0x1062   :  { %v739_v38 = vadd.f32 %v737_v37, %v1066_v11 }
0x1064   :  { %760 = vrot.lane.b32.xlu2 %v739_v38, %s933_s22  ;;  %v837_v39 = vmul.f32 -1.442695, %v739_v38  ;;  %s788_s22 = sshll.u32 %s936_s1, 4  ;;  %s789_s22 = int_to_ptr.vmem [resolvable:$true] %s788_s22 }
0x1066   :  { %886 = vpow2.f32 %v837_v39 }
0x106c   :  { %v887_v40 = vpop.eup %886 }
0x106d   :  { %v743_v41 = vadd.f32 1.0, %v887_v40 }
0x106f   :  { %888 = vrcp.f32 %v743_v41  ;;  %v755_v3 = vand.u32 2147483648, %v743_v41  ;;  %vm749_vm0 = vweird.f32 %v743_v41  ;;  %v753_v5 = vand.u32 2147483647, %v743_v41 }
0x1071   :  { %v756_v46 = vor.u32 1.1754944e-38, %v755_v3  ;;  %vm754_vm3 = vcmp.eq.f32.partialorder %v753_v5, 8.507059e+37 }
0x1075   :  { %v889_v42 = vpop.eup %888 }
0x1076   :  { %v745_v43 = vmul.f32 %v889_v42, %v743_v41  ;;  %vm750_vm1 = vweird.f32 %v889_v42 }
0x1077   :  { %vm751_vm2 = vmor %vm749_vm0, %vm750_vm1 }
0x1078   :  { %v746_v44 = vsub.f32 1.0, %v745_v43 }
0x107a   :  { %v747_v1 = vmul.f32 %v889_v42, %v746_v44 }
0x107c   :  { %v748_v45 = vadd.f32 %v889_v42, %v747_v1 }
0x107e   :  { %v752_v7 = vsel %vm751_vm2, %v889_v42, %v748_v45 }
0x107f   :  { %v757_v47 = vsel %vm754_vm3, %v756_v46, %v752_v7 }
0x1080   :  { %v770_v50 = vsub.f32 1.0, %v757_v47  ;;  %v776_v6 = vmul.f32 %v757_v47, %v685_v32 }
0x10be   :  { %v761_v11 = vpop.permute.xlu2 %760 }
0x10bf   :  { %v763_v48 = vmul.f32 %v761_v11, %v757_v47 }
0x10c1   :  { %765 = vrot.lane.b32.xlu0 %v763_v48, %s934_s5 }
0x1133   :  { %v766_v0 = vpop.permute.xlu0 %765 }
0x1134   :  { %v768_v49 = vadd.f32 %v766_v0, %v739_v38 }
0x1136   :  { %890 = vtanh.f32 %v768_v49 }
0x113c   :  { %v891_v2 = vpop.eup %890 }
0x113d   :  { %772 = vrot.lane.b32.xlu1 %v891_v2, %s935_s23 }
0x11af   :  { %v773_v4 = vpop.permute.xlu1 %772 }
0x11b0   :  { %v775_v51 = vmul.f32 %v773_v4, %v770_v50 }
0x11b2   :  { %v777_v52 = vadd.f32 %v776_v6, %v775_v51 }
0x11b4   :  { %779 = vrot.lane.b32.xlu2 %v777_v52, %s935_s23 }
0x120e   :  { %v780_v53 = vpop.permute.xlu2 %779 }
0x120f   :  { %782 = vst.msk [vmem:[#allocation4 + $0x7] sm:$0x1] %vm137_vm5, %v780_v53 }
0x1210   :  { %793 = dma.vmem_to_hbm [thread:$0]  %s789_s22, 128, %s791_s2, [#allocation5]  }
0x1211   :  { %930 = dma.done.wait [#allocation5], 128  }
0x1212   :  { %931 = vsyncadd [#allocation5], 4294967168 }
0x1213   :  { %798 = vsyncpa [#allocation5], 1 }

</bundles_post_ra>
